<compile_context>
chip_gen: v7x
topology: tpu7x:2x2x1
jax: 0.10.0
libtpu: 0.0.40
codegen_flags: <defaults>
</compile_context>

<pallas_src>
import math
import functools

import numpy as np
import jax
import jax.numpy as jnp
from jax.experimental import pallas as pl
from jax.experimental.pallas import tpu as pltpu


_ADJ_TILE = 512                         # adj tile (512x512 f32 = 1 MiB)
_SMALL_N_TILE = 512                     # below this, one tile covers the graph
_VMEM_LIMIT = 48 * 1024 * 1024          # explicit scoped-VMEM limit (v5e/v6e/v7x safe)
_STAGE2_VMEM_BUDGET = 40 * 1024 * 1024  # target footprint, headroom under the limit
_RESIDENT_SUPPORT_BUDGET = 12 * 1024 * 1024
_STAGE1_W_BUDGET = 8 * 1024 * 1024
_STAGE1_ROW_BUDGET = 16 * 1024 * 1024


def _round_up(a, b):
    return (a + b - 1) // b * b


def _pick_row_tiling(m, max_tm):
    """Row tile for the flattened (B*N_pad) x@W matmul.  Returns (TM, M_pad)."""
    for c in (2048, 1024, 512, 256, 128, 64):
        if c <= max_tm and m >= c and m % c == 0:
            return c, m
    if m <= min(1024, max_tm):
        tm = _round_up(m, 8)            # single tile, no extra padding
        return tm, tm
    # No clean divisor >= 64: pad the flat row slab rather than degenerating to
    # tiny tiles (grid-step overhead ~0.35us/step would dominate stage 1).
    tm = max(128, (min(512, max_tm) // 128) * 128)
    return tm, _round_up(m, tm)


def _pick_fout_tile(f_in, f_out_pad, w_itemsize):
    """F_out tile for stage 1 so the (double-buffered) resident W fits VMEM."""
    if 2 * f_in * f_out_pad * w_itemsize <= _STAGE1_W_BUDGET:
        return f_out_pad
    for c in (1024, 512, 256, 128):
        if f_out_pad % c == 0 and 2 * f_in * c * w_itemsize <= _STAGE1_W_BUDGET:
            return c
    return 128


# ---------------------------------------------------------------------------
# Stage 1: support = x @ W   (flattened rows, lane-dense F_out_pad output)
# ---------------------------------------------------------------------------
def _support_kernel(x_ref, w_ref, o_ref, *, compute_dtype):
    # x_ref: (TM, F_in)  w_ref: (F_in, TF1) already in compute_dtype
    # o_ref: (TM, TF1)
    a = x_ref[...].astype(compute_dtype)
    o_ref[...] = jnp.dot(a, w_ref[...],
                         preferred_element_type=jnp.float32).astype(o_ref.dtype)


# ---------------------------------------------------------------------------
# Stage 2: out = adj @ support (+ bias), grid (B, row-tile, F_out-tile, K-tile)
# with an f32 VMEM accumulator.  `support` is either fully resident per batch
# (block index independent of the row/K axes -> one HBM read per batch) or
# K-tiled when it does not fit the VMEM budget.
# ---------------------------------------------------------------------------
def _aggregate_kernel(*refs, compute_dtype, tk, support_resident, add_bias):
    if add_bias:
        adj_ref, s_ref, b_ref, o_ref, acc_ref = refs
    else:
        adj_ref, s_ref, o_ref, acc_ref = refs
        b_ref = None

    k = pl.program_id(3)

    @pl.when(k == 0)
    def _():
        acc_ref[...] = jnp.zeros_like(acc_ref)

    a = adj_ref[0].astype(compute_dtype)
    if support_resident:
        off = pl.multiple_of(k * tk, tk)          # aligned slice of the resident slab
        s = s_ref[pl.ds(off, tk), :]
    else:
        s = s_ref[...]
    acc_ref[...] += jnp.dot(a, s.astype(compute_dtype),
                            preferred_element_type=jnp.float32)

    @pl.when(k == pl.num_programs(3) - 1)
    def _():
        r = acc_ref[...]
        if add_bias:
            r = r + b_ref[...]                     # f32 bias add at finalize
        o_ref[0] = r.astype(o_ref.dtype)


@functools.partial(jax.jit, static_argnames=("compute_dtype",))
def graph_convolution(x, adj, weight, bias=None, *, compute_dtype=jnp.bfloat16):
    """Pallas GCN forward.

    x:      (B, N, F_in)  float32
    adj:    (B, N, N)     float32
    weight: (F_in, F_out) float32
    bias:   (1, 1, F_out) float32 or None
    compute_dtype: MXU operand dtype (accumulation is always f32).
                   Pass jnp.float32 for exact matmuls.
    returns (B, N, F_out) in x.dtype
    """
    B, N, F_in = x.shape
    F_out = weight.shape[1]
    out_dtype = x.dtype

    is_bf16 = np.dtype(compute_dtype) == np.dtype(jnp.bfloat16)
    comp_isize = np.dtype(compute_dtype).itemsize
    # Support stored in the compute dtype: bf16 halves the HBM stream feeding
    # the adj matmul (accuracy knob: compute_dtype=f32 keeps it exact).
    support_dtype = jnp.bfloat16 if is_bf16 else jnp.float32
    sup_isize = np.dtype(support_dtype).itemsize
    out_isize = np.dtype(out_dtype).itemsize

    # ---- layout padding -----------------------------------------------------
    F_out_pad = _round_up(F_out, 128)               # lane-dense stores
    if N > _SMALL_N_TILE:
        N_pad = _round_up(N, 128)                   # 128, not 256: less N^2 padding
        TN = TK = next(t for t in (_ADJ_TILE, 256, 128) if N_pad % t == 0)
    else:
        N_pad = _round_up(N, 8)                     # sublane alignment
        TN = TK = N_pad                             # one tile covers the graph

    # adj: if padding forces a copy anyway and the MXU path is bf16, emit the
    # padded copy directly in bf16 (pad + cast fuse) -> halves the dominant
    # N^2 HBM stream.  Without padding, keep the original dtype and cast after
    # the DMA (a standalone down-cast pass would cost more HBM than it saves).
    if N_pad != N:
        adj_store = jnp.bfloat16 if is_bf16 else adj.dtype
        adj_p = jnp.pad(adj, ((0, 0), (0, N_pad - N), (0, N_pad - N))).astype(adj_store)
    else:
        adj_p = adj
    adj_isize = np.dtype(adj_p.dtype).itemsize

    x_p = x if N_pad == N else jnp.pad(x, ((0, 0), (0, N_pad - N), (0, 0)))

    # weight: pre-cast to the MXU dtype (tiny, single pass) and pad lane-dense.
    w_p = weight.astype(compute_dtype)
    if F_out_pad != F_out:
        w_p = jnp.pad(w_p, ((0, 0), (0, F_out_pad - F_out)))

    add_bias = bias is not None
    if add_bias:
        b_p = bias.reshape(1, F_out).astype(jnp.float32)
        if F_out_pad != F_out:
            b_p = jnp.pad(b_p, ((0, 0), (0, F_out_pad - F_out)))

    # ---- stage 1: support = x @ W (batch folded into rows) ------------------
    M = B * N_pad
    x_flat = x_p.reshape(M, F_in)
    per_row = 2 * (F_in * x.dtype.itemsize + F_out_pad * sup_isize)
    max_tm = max(64, min(2048, _STAGE1_ROW_BUDGET // max(per_row, 1)))
    TM, M_pad = _pick_row_tiling(M, max_tm)
    if M_pad != M:
        # Rare: only when B*N_pad has no divisor >= 64; padded rows are never
        # referenced by stage 2 (it indexes per-batch row slabs directly).
        x_flat = jnp.pad(x_flat, ((0, M_pad - M), (0, 0)))
    TF1 = _pick_fout_tile(F_in, F_out_pad, comp_isize)
    n_m, n_f1 = M_pad // TM, F_out_pad // TF1

    w_reads = 1 if n_f1 == 1 else n_m
    support_flat = pl.pallas_call(
        functools.partial(_support_kernel, compute_dtype=compute_dtype),
        out_shape=jax.ShapeDtypeStruct((M_pad, F_out_pad), support_dtype),
        grid_spec=pltpu.PrefetchScalarGridSpec(
            num_scalar_prefetch=0,
            grid=(n_m, n_f1),
            in_specs=[
                pl.BlockSpec((TM, F_in), lambda m, f: (m, 0)),
                pl.BlockSpec((F_in, TF1), lambda m, f: (0, f)),   # resident / F-tiled W
            ],
            out_specs=pl.BlockSpec((TM, TF1), lambda m, f: (m, f)),
        ),
        compiler_params=pltpu.CompilerParams(
            dimension_semantics=("parallel", "parallel"),
            vmem_limit_bytes=_VMEM_LIMIT),
        cost_estimate=pl.CostEstimate(
            flops=2 * M_pad * F_in * F_out_pad,
            transcendentals=0,
            bytes_accessed=(M_pad * F_in * x.dtype.itemsize
                            + w_reads * F_in * F_out_pad * comp_isize
                            + M_pad * F_out_pad * sup_isize)),
    )(x_flat, w_p)
    # support stays flat (M_pad, F_out_pad); stage 2 reads per-batch row slabs
    # out of it directly (no reshape / slice pass).

    # ---- stage 2: out = adj @ support (+ bias) -------------------------------
    n_i = N_pad // TN

    # Megacore: with B==1 and a single row tile everything would land on one
    # v7x TensorCore; split F_out into a parallel axis instead (adj is tiny in
    # this regime, so its n_f-fold re-read is negligible).
    TF2 = F_out_pad
    if B == 1 and n_i == 1 and F_out_pad >= 256:
        half = F_out_pad // 2
        TF2 = half if half % 128 == 0 else 128

    # Resident support: one HBM read per batch instead of n_i re-reads.
    support_resident = N_pad * TF2 * sup_isize <= _RESIDENT_SUPPORT_BUDGET

    def footprint(tn, tk):
        return (2 * tn * tk * adj_isize                                  # adj, 2 bufs
                + 2 * (N_pad if support_resident else tk) * TF2 * sup_isize
                + tn * TF2 * 4                                           # f32 accumulator
                + 2 * tn * TF2 * out_isize                               # output, 2 bufs
                + 2 * TF2 * 4)                                           # bias

    # Shrink adj tiles only if a huge F_out would overflow the VMEM budget.
    while (footprint(TN, TK) > _STAGE2_VMEM_BUDGET and TN >= 256
           and (TN // 2) % 128 == 0 and N_pad % (TN // 2) == 0):
        TN //= 2
        TK //= 2

    n_i, n_k, n_f2 = N_pad // TN, N_pad // TK, F_out_pad // TF2

    if support_resident:
        # Block index independent of (i, k): DMA'd once per (batch, f-tile).
        s_spec = pl.BlockSpec((N_pad, TF2), lambda b, i, f, k: (b, f))
    else:
        s_spec = pl.BlockSpec((TK, TF2), lambda b, i, f, k: (b * n_k + k, f))

    in_specs = [pl.BlockSpec((1, TN, TK), lambda b, i, f, k: (b, i, k)), s_spec]
    args = [adj_p, support_flat]
    if add_bias:
        in_specs.append(pl.BlockSpec((1, TF2), lambda b, i, f, k: (0, f)))
        args.append(b_p)

    sup_reads = 1 if support_resident else n_i
    out_padded = pl.pallas_call(
        functools.partial(_aggregate_kernel, compute_dtype=compute_dtype,
                          tk=TK, support_resident=support_resident,
                          add_bias=add_bias),
        out_shape=jax.ShapeDtypeStruct((B, N_pad, F_out_pad), out_dtype),
        grid_spec=pltpu.PrefetchScalarGridSpec(
            num_scalar_prefetch=0,
            grid=(B, n_i, n_f2, n_k),
            in_specs=in_specs,
            out_specs=pl.BlockSpec((1, TN, TF2), lambda b, i, f, k: (b, i, f)),
            scratch_shapes=[pltpu.VMEM((TN, TF2), jnp.float32)],
        ),
        compiler_params=pltpu.CompilerParams(
            dimension_semantics=("parallel", "parallel", "parallel", "arbitrary"),
            vmem_limit_bytes=_VMEM_LIMIT),
        cost_estimate=pl.CostEstimate(
            flops=2 * B * N_pad * N_pad * F_out_pad,
            transcendentals=0,
            bytes_accessed=(n_f2 * B * N_pad * N_pad * adj_isize
                            + sup_reads * B * N_pad * F_out_pad * sup_isize
                            + (F_out_pad * 4 if add_bias else 0)
                            + B * N_pad * F_out_pad * out_isize)),
    )(*args)

    # Slice off node / feature padding (plain XLA glue).
    return out_padded[:, :N, :F_out]


def init_params(key, in_features, out_features, bias=False):
    """Deterministic init matching reset_parameters(): U(-stdv, stdv),
    stdv = 1/sqrt(out_features)."""
    stdv = 1.0 / math.sqrt(out_features)
    kw, kb = jax.random.split(key)
    weight = jax.random.uniform(
        kw, (in_features, out_features), jnp.float32, minval=-stdv, maxval=stdv)
    b = None
    if bias:
        b = jax.random.uniform(
            kb, (1, 1, out_features), jnp.float32, minval=-stdv, maxval=stdv)
    return weight, b


if __name__ == "__main__":
    key = jax.random.PRNGKey(0)
    k_x, k_adj, k_p = jax.random.split(key, 3)

    def ref_fwd(x, adj, w, b):
        out = jnp.einsum("bnm,bmf->bnf", adj, jnp.einsum("bni,io->bno", x, w))
        return out if b is None else out + b

    B, N = 2, 16          # batch, number of graph nodes
    F_in, F_out = 8, 32   # in_features -> out_features

    x = jax.random.normal(k_x, (B, N, F_in), jnp.float32)
    adj = jax.random.uniform(k_adj, (B, N, N), jnp.float32)

    # --- bias=False (module default), exact f32 MXU path ---
    w_nb, _ = init_params(k_p, F_in, F_out, bias=False)
    out_nb = jax.block_until_ready(
        graph_convolution(x, adj, w_nb, None, compute_dtype=jnp.float32))
    assert out_nb.shape == (B, N, F_out)
    assert jnp.allclose(out_nb, ref_fwd(x, adj, w_nb, None), atol=1e-5, rtol=1e-5)

    # --- bias=True, exact f32 MXU path ---
    w_b, bias = init_params(k_p, F_in, F_out, bias=True)
    out_b32 = jax.block_until_ready(
        graph_convolution(x, adj, w_b, bias, compute_dtype=jnp.float32))
    assert out_b32.shape == (B, N, F_out)
    assert jnp.allclose(out_b32, ref_fwd(x, adj, w_b, bias), atol=1e-5, rtol=1e-5)

    # --- bias=True, default bf16 MXU path (perf mode; looser tolerance) ---
    out_bf = jax.block_until_ready(graph_convolution(x, adj, w_b, bias))
    assert out_bf.shape == (B, N, F_out)
    assert jnp.allclose(out_bf, ref_fwd(x, adj, w_b, bias), atol=5e-2, rtol=5e-2)

    # --- odd shapes: exercises the N / F_out padding paths (exact f32) ---
    B2, N2, F_in2, F_out2 = 2, 20, 8, 40
    x2 = jax.random.normal(k_x, (B2, N2, F_in2), jnp.float32)
    adj2 = jax.random.uniform(k_adj, (B2, N2, N2), jnp.float32)
    w2, b2 = init_params(k_p, F_in2, F_out2, bias=True)
    out2 = jax.block_until_ready(
        graph_convolution(x2, adj2, w2, b2, compute_dtype=jnp.float32))
    assert out2.shape == (B2, N2, F_out2)
    assert jnp.allclose(out2, ref_fwd(x2, adj2, w2, b2), atol=1e-5, rtol=1e-5)

    # --- B=1 small graph with F_out_pad >= 256: exercises the stage-2
    #     parallel F_out split (v7x megacore path), exact f32 ---
    B3, N3, F_in3, F_out3 = 1, 16, 8, 200
    x3 = jax.random.normal(k_x, (B3, N3, F_in3), jnp.float32)
    adj3 = jax.random.uniform(k_adj, (B3, N3, N3), jnp.float32)
    w3, _ = init_params(k_p, F_in3, F_out3, bias=False)
    out3 = jax.block_until_ready(
        graph_convolution(x3, adj3, w3, None, compute_dtype=jnp.float32))
    assert out3.shape == (B3, N3, F_out3)
    assert jnp.allclose(out3, ref_fwd(x3, adj3, w3, None), atol=1e-5, rtol=1e-5)

    print("KERNEL_OK")
</pallas_src>

<mosaic_0001>
module attributes {stable_mosaic.version = 11 : i64} {
  func.func @_aggregate_kernel(%arg0: i32, %arg1: i32, %arg2: i32, %arg3: i32, %arg4: memref<1x16x16xf32, #tpu.memory_space<vmem>>, %arg5: memref<16x128xf32, #tpu.memory_space<vmem>>, %arg6: memref<1x16x128xf32, #tpu.memory_space<vmem>>, %arg7: memref<16x128xf32, #tpu.memory_space<vmem>>) attributes {dimension_semantics = [#tpu.dimension_semantics<parallel>, #tpu.dimension_semantics<parallel>, #tpu.dimension_semantics<parallel>, #tpu.dimension_semantics<arbitrary>], iteration_bounds = array<i64: 2, 1, 1, 1>, scalar_prefetch = 0 : i64, scratch_operands = 1 : i64, tpu.core_type = #tpu.core_type<tc>, window_params = [{transform_indices = @transform_0, window_bounds = array<i64: 1, 16, 16>}, {transform_indices = @transform_1, window_bounds = array<i64: 16, 128>}, {transform_indices = @transform_2, window_bounds = array<i64: 1, 16, 128>}]} {
    %c0_i32 = arith.constant 0 : i32
    %0 = arith.cmpi eq, %arg3, %c0_i32 : i32
    %1 = arith.extui %0 : i1 to i32
    %c0_i32_0 = arith.constant 0 : i32
    %2 = arith.cmpi ne, %1, %c0_i32_0 : i32
    scf.if %2 {
      %cst_10 = arith.constant 0.000000e+00 : f32
      %16 = vector.broadcast %cst_10 : f32 to vector<16x128xf32>
      %c0_11 = arith.constant 0 : index
      %c0_12 = arith.constant 0 : index
      %17 = vector.load %arg7[%c0_11, %c0_12] : memref<16x128xf32, #tpu.memory_space<vmem>>, vector<16x128xf32>
      tpu.vector_store %arg7[%c0_11, %c0_12], %16 {strides = array<i32>} : memref<16x128xf32, #tpu.memory_space<vmem>>, vector<16x128xf32>,
    } else {
    }
    %c0 = arith.constant 0 : index
    %c0_1 = arith.constant 0 : index
    %c0_2 = arith.constant 0 : index
    %3 = vector.load %arg4[%c0, %c0_1, %c0_2] : memref<1x16x16xf32, #tpu.memory_space<vmem>>, vector<1x16x16xf32>
    %4 = vector.shape_cast %3 : vector<1x16x16xf32> to vector<16x16xf32>
    %c16_i32 = arith.constant 16 : i32
    %5 = arith.muli %arg3, %c16_i32 : i32
    %6 = tpu.assume_multiple %5, 16 : i32
    %7 = arith.index_cast %6 : i32 to index
    %c0_3 = arith.constant 0 : index
    %8 = vector.load %arg5[%7, %c0_3] : memref<16x128xf32, #tpu.memory_space<vmem>>, vector<16x128xf32>
    %c0_4 = arith.constant 0 : index
    %c0_5 = arith.constant 0 : index
    %9 = vector.load %arg7[%c0_4, %c0_5] : memref<16x128xf32, #tpu.memory_space<vmem>>, vector<16x128xf32>
    %cst = arith.constant dense<0.000000e+00> : vector<16x128xf32>
    %10 = tpu.matmul %4, %8, %cst {dimension_numbers = #tpu.dot_dimension_numbers<[1], [0], [0], [1], [0, 0, 1, 1], [], []>} : vector<16x16xf32>, vector<16x128xf32>, vector<16x128xf32> -> vector<16x128xf32>
    %11 = arith.addf %9, %10 : vector<16x128xf32>
    %c0_6 = arith.constant 0 : index
    %c0_7 = arith.constant 0 : index
    %12 = vector.load %arg7[%c0_6, %c0_7] : memref<16x128xf32, #tpu.memory_space<vmem>>, vector<16x128xf32>
    tpu.vector_store %arg7[%c0_6, %c0_7], %11 {strides = array<i32>} : memref<16x128xf32, #tpu.memory_space<vmem>>, vector<16x128xf32>,
    %c0_i32_8 = arith.constant 0 : i32
    %13 = arith.cmpi eq, %arg3, %c0_i32_8 : i32
    %14 = arith.extui %13 : i1 to i32
    %c0_i32_9 = arith.constant 0 : i32
    %15 = arith.cmpi ne, %14, %c0_i32_9 : i32
    scf.if %15 {
      %c0_10 = arith.constant 0 : index
      %c0_11 = arith.constant 0 : index
      %16 = vector.load %arg7[%c0_10, %c0_11] : memref<16x128xf32, #tpu.memory_space<vmem>>, vector<16x128xf32>
      %c0_12 = arith.constant 0 : index
      %c0_13 = arith.constant 0 : index
      %c0_14 = arith.constant 0 : index
      %17 = vector.load %arg6[%c0_12, %c0_13, %c0_14] : memref<1x16x128xf32, #tpu.memory_space<vmem>>, vector<1x16x128xf32>
      %18 = vector.shape_cast %17 : vector<1x16x128xf32> to vector<16x128xf32>
      %19 = vector.shape_cast %16 : vector<16x128xf32> to vector<1x16x128xf32>
      tpu.vector_store %arg6[%c0_12, %c0_13, %c0_14], %19 {strides = array<i32>} : memref<1x16x128xf32, #tpu.memory_space<vmem>>, vector<1x16x128xf32>,
    } else {
    }
    return
  }
  func.func @transform_0(%arg0: i32, %arg1: i32, %arg2: i32, %arg3: i32) -> (i32, i32, i32) {
    %c0_i32 = arith.constant 0 : i32
    return %arg0, %arg1, %arg3 : i32, i32, i32
  }
  func.func @transform_1(%arg0: i32, %arg1: i32, %arg2: i32, %arg3: i32) -> (i32, i32) {
    %c0_i32 = arith.constant 0 : i32
    return %arg0, %arg2 : i32, i32
  }
  func.func @transform_2(%arg0: i32, %arg1: i32, %arg2: i32, %arg3: i32) -> (i32, i32, i32) {
    %c0_i32 = arith.constant 0 : i32
    return %arg0, %arg1, %arg2 : i32, i32, i32
  }
}

module attributes {stable_mosaic.version = 11 : i64} {
  func.func @_support_kernel(%arg0: i32, %arg1: i32, %arg2: memref<32x8xf32, #tpu.memory_space<vmem>>, %arg3: memref<8x128xf32, #tpu.memory_space<vmem>>, %arg4: memref<32x128xf32, #tpu.memory_space<vmem>>) attributes {dimension_semantics = [#tpu.dimension_semantics<parallel>, #tpu.dimension_semantics<parallel>], iteration_bounds = array<i64: 1, 1>, scalar_prefetch = 0 : i64, scratch_operands = 0 : i64, tpu.core_type = #tpu.core_type<tc>, window_params = [{transform_indices = @transform_0, window_bounds = array<i64: 32, 8>}, {transform_indices = @transform_1, window_bounds = array<i64: 8, 128>}, {transform_indices = @transform_2, window_bounds = array<i64: 32, 128>}]} {
    %c0 = arith.constant 0 : index
    %c0_0 = arith.constant 0 : index
    %0 = vector.load %arg2[%c0, %c0_0] : memref<32x8xf32, #tpu.memory_space<vmem>>, vector<32x8xf32>
    %c0_1 = arith.constant 0 : index
    %c0_2 = arith.constant 0 : index
    %1 = vector.load %arg3[%c0_1, %c0_2] : memref<8x128xf32, #tpu.memory_space<vmem>>, vector<8x128xf32>
    %cst = arith.constant dense<0.000000e+00> : vector<32x128xf32>
    %2 = tpu.matmul %0, %1, %cst {dimension_numbers = #tpu.dot_dimension_numbers<[1], [0], [0], [1], [0, 0, 1, 1], [], []>} : vector<32x8xf32>, vector<8x128xf32>, vector<32x128xf32> -> vector<32x128xf32>
    %c0_3 = arith.constant 0 : index
    %c0_4 = arith.constant 0 : index
    %3 = vector.load %arg4[%c0_3, %c0_4] : memref<32x128xf32, #tpu.memory_space<vmem>>, vector<32x128xf32>
    tpu.vector_store %arg4[%c0_3, %c0_4], %2 {strides = array<i32>} : memref<32x128xf32, #tpu.memory_space<vmem>>, vector<32x128xf32>,
    return
  }
  func.func @transform_0(%arg0: i32, %arg1: i32) -> (i32, i32) {
    %c0_i32 = arith.constant 0 : i32
    %c0_i32_0 = arith.constant 0 : i32
    return %arg0, %c0_i32 : i32, i32
  }
  func.func @transform_1(%arg0: i32, %arg1: i32) -> (i32, i32) {
    %c0_i32 = arith.constant 0 : i32
    %c0_i32_0 = arith.constant 0 : i32
    return %c0_i32, %arg1 : i32, i32
  }
  func.func @transform_2(%arg0: i32, %arg1: i32) -> (i32, i32) {
    %c0_i32 = arith.constant 0 : i32
    return %arg0, %arg1 : i32, i32
  }
}

</mosaic_0001>

<bundles_post_ra>
// kernel: graph_convolution.3
= control target key start
LH: loop header
LB: loop body
LE: loop exit
PB: predicated region body
PF: predicated region fallthrough
CT: control target
= control target key end

     0   :  { %7 = vsyncpa [#allocation4], 0  ;;  %s771_s0 = inlined_call_operand.vmem [shape: f32[2,16,16], index: 0, kind: input, shape index: {}]   ;;  %s772_s1 = inlined_call_operand.vmem [shape: f32[32,128], index: 1, kind: input, shape index: {}]   ;;  %s773_s2 = inlined_call_operand.hbm [shape: f32[2,16,128], index: 2, kind: output, shape index: {}]  }
   0x1   :  { %9 = vsyncpa [#allocation4 + $0x1], 0  ;;  %s652_s9 = smov 0   ;;  %s654_s10 = smov 0  }
   0x2   :  { %s656_s11 = smov 0   ;;  %s658_s12 = smov 0  }
   0x3   :  { %s660_s13 = smov 0   ;;  %s662_s14 = smov 0  }
   0x4 LB: > { %s463_s15 = sadd.s32 4294967295, %s632_s14   ;;  %s464_s16 = sadd.s32 4294967294, %s632_s14   ;;  %s632_s14 = sphi %s662_s14, %s15_s14   ;;  %s628_s13 = sphi %s660_s13, %s780_s13   ;;  %s624_s12 = sphi %s658_s12, %s779_s12   ;;  %s620_s11 = sphi %s656_s11, %s778_s11   ;;  %s616_s10 = sphi %s654_s10, %s777_s10   ;;  %s612_s9 = sphi %s652_s9, %s776_s9  }
   0x5   : > { %s41_s17 = sadd.s32 1, %s628_s13  ;;  %s110_s18 = sadd.s32 1, %s620_s11 }
   0x6   : > { %p43_p0 = scmp.ge.s32.totalorder %s41_s17, 2  ;;  %p120_p1 = scmp.ne.s32.totalorder %s620_s11, %s616_s10 }
   0x7   : > { %p121_p2 = scmp.eq.s32.totalorder %s463_s15, 1  ;;  %p126_p3 = scmp.ne.s32.totalorder %s616_s10, %s612_s9 }
   0x8   : > { %s782_s17 = smov (%p43_p0, %s41_s17), 0  ;;  %p127_p5 = scmp.eq.s32.totalorder %s464_s16, 1 }
   0x9   : > { %p692_p4 = por %p121_p2, %p120_p1  ;;  %s103_s20 = ssub.s32 %s628_s13, %s782_s17 }
   0xa   : > { %p467_p6 = scmp.ge.s32.totalorder %s632_s14, 1  ;;  %p108_p7 = scmp.eq.s32.totalorder %s103_s20, 0 }
   0xb   : > { %p699_p8 = por %p127_p5, %p126_p3  ;;  %p173_p9 = scmp.lt.s32.totalorder %s632_s14, 3 }
   0xc   : > { %s705_s22 = scalar_select %p108_p7, %s620_s11, %s110_s18  }
   0xd   : > { %p174_p10 = pnand %p467_p6, %p173_p9 }
   0xe   : > { %s471_s23 = sshll.u32 (!%p174_p10), %s624_s12, 1  ;;  %p211_p11 = scmp.lt.s32.totalorder (!%p174_p10), %s624_s12, 1  ;;  %vm247_vm0 = vcmask (!%p174_p10), 130048  }
   0xf   : > { %177 = sbr.rel (%p174_p10) target bundleno = 262 (0x106), region = 28  ;;  %p224_p12 = scmp.lt.s32.totalorder (!%p174_p10), %s471_s23, 3 }
  0x10   : > { %s207_s5 = sand.u32 (!%p174_p10), 1, %s616_s10   ;;  %s481_s15 = sshll.u32 (!%p174_p10), %s624_s12, 8 }
  0x11   : > { %s468_s6 = sshll.u32 (!%p174_p10), %s207_s5, 4  ;;  %s723_s20 = scalar_lea.hbm (!%p174_p10), %s773_s2, %s481_s15 }
  0x12   : > { %s209_s7 = scalar_lea.vmem (!%p174_p10), [#allocation3], %s468_s6 }
  0x13   : > { %s357_s8 = sshll.u32 (!%p174_p10), %s209_s7, 4  ;;  %s718_s8 = int_to_ptr.vmem [resolvable:$true] %s357_s8 }
  0x16   : > { %s212_s24 = scalar_select %p211_p11, %s624_s12, 1 }
  0x17   : > { %s784_s23 = smov (!%p224_p12, %s471_s23), 3  ;;  %s634_s12 = smov [#allocation3]  }
  0x18   : > { %s480_s25 = sshll.u32 %s212_s24, 4  ;;  %s472_s26 = sshll.u32 %s784_s23, 3 }
  0x19   : > { %s221_s29 = scalar_lea.vmem %s771_s0, %s480_s25  ;;  %s230_s4 = scalar_lea.vmem %s772_s1, %s472_s26 }
  0x1a   : > { %v239_v0 = vld [vmem:[%s221_s29] sm:$0xff]  ;;  %v244_v2 = vld [vmem:[%s230_s4 + $0x8] sm:$0xff]  ;;  %s725_s23 = scalar_lea.sflag [#allocation4], %s207_s5  ;;  %s554_s24 = scalar_lea.vmem %s718_s8, 256 }
  0x1b   : > { %v243_v1 = vld [vmem:[%s230_s4] sm:$0xff]  ;;  %490 = vmatprep.mubr.msk.f32.mxu0 %vm247_vm0, %v239_v0  ;;  %v240_v4 = vld [vmem:[%s221_s29 + $0x8] sm:$0xff]  ;;  %p555_p13 = scmp.ne.s32.totalorder %s718_s8, %s554_s24  ;;  %s558_s25 = sshll.u32 %s634_s12, 4  ;;  %s559_s25 = int_to_ptr.vmem [resolvable:$false] %s558_s25 }
  0x1c   : > { %v493_v3 = vpack.c.bf16 %v244_v2, %v243_v1  ;;  %s560_s26 = scalar_lea.vmem %s559_s25, 512  ;;  %p561_p2 = scmp.lt.s32.totalorder %s718_s8, %s559_s25 }
  0x1d   : > { %p556_p0 = pnand %p555_p13, %p692_p4  ;;  %p562_p3 = scmp.lt.s32.totalorder %s560_s26, %s554_s24 }
  0x1e   : > { %494 = vmatprep.subr.bf16.mxu0 %v493_v3 }
  0x1f   : > { %496 = vmatpush3.bf16.msra.mxu0 %v493_v3  ;;  %p557_p1 = pneg %p556_p0  ;;  %p563_p5 = por %p562_p3, %p561_p2 }
  0x21   : > { %p564_p6 = pnand %p563_p5, %p557_p1 }
  0x22   : > { %491 = vmatmul.mubr.msk.f32.vlgmr.msra.gmra.mrb[0].mxu0 %vm247_vm0, %v240_v4 }
  0xf5   : > { %v492_v5 = vpop.f32.mrb[0].mxu0 }
  0xf6   : > { %339 = vst [vmem:[%s209_s7 + $0x8] sm:$0xff] %v492_v5  ;;  %v320_v6 = vpop.f32.mrb[1].mxu0 }
  0xf7   : > { %338 = vst [vmem:[%s209_s7] sm:$0xff] %v320_v6 }
  0xf8   : > { %567 = shalt.err (!%p564_p6)
}
  0xf9   : > { %s568_s27 = scalar_lea.hbm %s723_s20, 256  ;;  %s572_s30 = scalar_lea.hbm %s773_s2, 512 }
  0xfa   : > { %p569_p7 = scmp.ne.s32.totalorder %s723_s20, %s568_s27  ;;  %p573_p11 = scmp.lt.u32.totalorder %s723_s20, %s773_s2 }
  0xfb   : > { %p574_p12 = scmp.lt.u32.totalorder %s572_s30, %s568_s27  ;;  %p576_p0 = scmp.lt.u32.totalorder %s568_s27, %s723_s20 }
  0xfc   : > { %p570_p9 = pnand %p569_p7, %p692_p4 }
  0xfd   : > { %p575_p13 = por %p574_p12, %p573_p11 }
  0xfe   : > { %p571_p10 = pneg %p570_p9 }
  0xff   : > { %p577_p1 = por %p576_p0, %p575_p13 }
 0x101   : > { %p578_p2 = pnand %p577_p1, %p571_p10 }
 0x103   : > { %581 = shalt.err (!%p578_p2)
}
 0x104   : > { %s635_s5 = smov 128   ;;  %s636_s6 = smov 8  }
 0x105   : > { %497 = dma.vmem_to_hbm [thread:$0]  (%p692_p4), %s718_s8, 256, %s723_s20, %s725_s23, %s635_s5, %s635_s5, %s636_s6  }
 0x106 PF: > { %p503_p3 = scmp.ge.s32.totalorder %s632_s14, 2  ;;  %s372_s7 = sand.u32 1, %s612_s9  }
 0x107   : > { %s373_s15 = scalar_lea.sflag [#allocation4], %s372_s7 }
 0x108   : > { %p500_p5 = pnand %p503_p3, %p699_p8 }
 0x10a   : > { %607 = dma.done.wait (!%p500_p5), %s373_s15, 256  }
 0x10b   : > { %609 = vsyncadd (!%p500_p5), %s373_s15, 4294967040  ;;  %s15_s14 = sadd.s32 1, %s632_s14   ;;  %s776_s9 = smov %s616_s10 }
 0x10c   : > { %p12_p6 = scmp.ge.s32.totalorder %s15_s14, 4   ;;  %s777_s10 = smov %s620_s11 }
 0x10d   : > { %s778_s11 = smov %s705_s22  ;;  %s779_s12 = smov %s628_s13 }
 0x10e   : > { %s780_s13 = smov %s782_s17  ;;  %14 = sbr.rel (!%p12_p6) target bundleno = 4 (0x4), region = 75 }
 0x115   :  { %378 = vsyncpa [#allocation4], 1 }
 0x116   :  { %380 = vsyncpa [#allocation4 + $0x1], 1 }

// kernel: graph_convolution.2
= control target key start
LH: loop header
LB: loop body
LE: loop exit
PB: predicated region body
PF: predicated region fallthrough
CT: control target
= control target key end

     0   :  { %vm16_vm0 = vcmask 64512   ;;  %s183_s1 = inlined_call_operand.vmem [shape: f32[8,128], index: 1, kind: input, shape index: {}]   ;;  %s184_s0 = inlined_call_operand.vmem [shape: f32[32,8], index: 0, kind: input, shape index: {}]   ;;  %s185_s2 = inlined_call_operand.vmem [shape: f32[32,128], index: 2, kind: output, shape index: {}]  }
   0x1   :  { %v15_v0 = vld [vmem:[%s183_s1] sm:$0xff]  ;;  %v13_v2 = vld [vmem:[%s184_s0 + $0x10] sm:$0xff]  ;;  %v12_v3 = vld [vmem:[%s184_s0 + $0x8] sm:$0xff] }
   0x2   :  { %v11_v1 = vld [vmem:[%s184_s0] sm:$0xff]  ;;  %131 = vmatprep.subr.mxu0 %v15_v0  ;;  %139 = vmatprep.subr.mxu1 %v15_v0  ;;  %v14_v4 = vld [vmem:[%s184_s0 + $0x18] sm:$0xff] }
   0x3   :  { %132 = vmatpush3.msra.mxu0 %v15_v0  ;;  %140 = vmatpush3.msra.mxu1 %v15_v0 }
   0x4   :  { %133 = vmatprep.mubr.msk.f32.mxu0 %vm16_vm0, %v11_v1  ;;  %136 = vmatprep.mubr.msk.f32.mxu1 %vm16_vm0, %v13_v2 }
   0x5   :  { %134 = vmatmul.mubr.msk.f32.vlgmr.msra.gmra.mrb[0].mxu0 %vm16_vm0, %v12_v3  ;;  %137 = vmatmul.mubr.msk.f32.vlgmr.msra.gmra.mrb[0].mxu1 %vm16_vm0, %v14_v4 }
  0xd8   :  { %v135_v5 = vpop.f32.mrb[0].mxu0  ;;  %v138_v6 = vpop.f32.mrb[0].mxu1 }
  0xd9   :  { %115 = vst [vmem:[%s185_s2 + $0x8] sm:$0xff] %v135_v5  ;;  %117 = vst [vmem:[%s185_s2 + $0x18] sm:$0xff] %v138_v6  ;;  %v95_v7 = vpop.f32.mrb[1].mxu0  ;;  %v105_v8 = vpop.f32.mrb[1].mxu1 }
  0xda   :  { %114 = vst [vmem:[%s185_s2] sm:$0xff] %v95_v7  ;;  %116 = vst [vmem:[%s185_s2 + $0x10] sm:$0xff] %v105_v8 }

</bundles_post_ra>
